<compile_context>
chip_gen: v7x
topology: tpu7x:2x2x1
jax: 0.10.0
libtpu: 0.0.40
codegen_flags: <defaults>
</compile_context>

<pallas_src>
from functools import partial
import math

import jax
import jax.numpy as jnp
from jax import lax
from jax.experimental import pallas as pl
from jax.experimental.pallas import tpu as pltpu


_STRIP_BUDGET_BYTES = 12 * 1024 * 1024   # f32 exp-strip cache budget (fits all gens)


def _round_up(x, m):
    return ((x + m - 1) // m) * m


def _choose_tiling(n, block_m, block_n, strip_budget_bytes):
    """Pick (bm, bn, n_pad) so blocks are (8,128)-friendly and the strip fits VMEM."""
    n8 = _round_up(n, 8)
    bm = max(8, min(_round_up(block_m, 8), n8))
    while True:
        n_pad = _round_up(n8, bm)
        bn_target = _round_up(block_n, 128)
        if n_pad <= bn_target:
            bn = n_pad                                   # single column tile
        else:
            bn = bn_target
            lcm = bm * bn // math.gcd(bm, bn)
            n_pad = _round_up(n_pad, lcm)
        if bm * n_pad * 4 <= strip_budget_bytes or bm <= 8:
            return bm, bn, n_pad
        bm = max(8, _round_up(bm // 2, 8))               # shrink rows, keep strip small


def _granular_loss_kernel(mask_ref, xr_ref, xc_ref, out_ref,
                          strip_ref, s_row_ref, simpos_ref, posmask_ref,
                          simneg_ref, masksum_ref,
                          *, tm, tn, n_cols, pad_cols):
    i = pl.program_id(0)          # row block (parallel)
    j = pl.program_id(1)          # column block (sequential sweep of the row strip)

    @pl.when(j == 0)
    def _init():
        # Each padded column contributes exactly exp(0) = 1 to the negative
        # exp-sum; compensate once here instead of masking every tile.
        s_row_ref[...] = jnp.full(s_row_ref.shape, -float(pad_cols), jnp.float32)
        simpos_ref[...] = jnp.zeros_like(simpos_ref)
        posmask_ref[...] = jnp.zeros_like(posmask_ref)
        simneg_ref[...] = jnp.zeros_like(simneg_ref)
        masksum_ref[...] = jnp.zeros_like(masksum_ref)

    mask = mask_ref[...].astype(jnp.float32)              # (tm, tn) 0/1 affinity
    # Centers arrive pre-normalized (cosine norm, 1/temperature folded into the
    # row operand); contract both operands on the last dim -> no transpose.
    sim = lax.dot_general(xr_ref[...], xc_ref[...],
                          dimension_numbers=(((1,), (1,)), ((), ())),
                          preferred_element_type=jnp.float32)   # sim_x / t
    e = jnp.exp(sim)

    # ---- negative side (no row-global info needed) -------------------------
    # exp(sim_neg) = exp((1 - mask) * sim): 1 where mask==1, exp(sim) where mask==0.
    s_row_ref[...] += jnp.sum(jnp.where(mask > 0.0, 1.0, e), axis=1, keepdims=True)
    simneg_ref[...] += jnp.sum((1.0 - mask) * sim, axis=1, keepdims=True)
    masksum_ref[...] += jnp.sum(mask, axis=1, keepdims=True)

    # ---- positive side: cache pos_mask * exp(sim) for the log pass ---------
    row0 = i * tm
    col0 = j * tn

    def _pos_side(pos_mask):
        strip_ref[j] = pos_mask * e
        simpos_ref[...] += jnp.sum(pos_mask * sim, axis=1, keepdims=True)
        posmask_ref[...] += jnp.sum(pos_mask, axis=1, keepdims=True)

    overlaps_diag = jnp.logical_and(row0 < col0 + tn, col0 < row0 + tm)

    @pl.when(overlaps_diag)       # only diagonal-touching tiles pay for the iotas
    def _():
        rid = lax.broadcasted_iota(jnp.int32, (tm, tn), 0) + row0
        cid = lax.broadcasted_iota(jnp.int32, (tm, tn), 1) + col0
        _pos_side(jnp.where(rid == cid, 0.0, mask))

    @pl.when(jnp.logical_not(overlaps_diag))
    def _():
        _pos_side(mask)

    # ---- finalize: log pass over the cached strip (pure VMEM, no HBM) ------
    @pl.when(j == n_cols - 1)
    def _finalize():
        s = s_row_ref[...]                                 # (tm, 1) complete row sums
        # NOTE: like the PyTorch reference, no max-shift before exp/log; very
        # small temperatures can overflow f32 exactly as the reference does.

        def body(c, acc):
            pe = strip_ref[c]                              # pos_mask * exp(sim)
            # pe > 0  <=>  pos_mask == 1 (exp is strictly positive); log(1)=0 else.
            vals = jnp.where(pe > 0.0, pe + s, 1.0)
            return acc + jnp.sum(jnp.log(vals), axis=1, keepdims=True)

        losslog = lax.fori_loop(0, n_cols, body,
                                jnp.zeros((tm, 1), jnp.float32))

        lane = lax.broadcasted_iota(jnp.int32, (tm, 8), 1)
        packed = (jnp.where(lane == 0, losslog, 0.0)
                  + jnp.where(lane == 1, simpos_ref[...], 0.0)
                  + jnp.where(lane == 2, posmask_ref[...], 0.0)
                  + jnp.where(lane == 3, simneg_ref[...], 0.0)
                  + jnp.where(lane == 4, masksum_ref[...], 0.0))
        out_ref[...] = packed


def granular_contrastive_loss(affinity, centers, temperature=1.0,
                              block_m=256, block_n=1024):
    """Forward pass of GranularContrastiveLoss.

    affinity: (N, N) 0/1 positive-pair mask (diagonal zeroed internally for the
              positive side, exactly like the torch module).
    centers:  (N, D) granular-ball centers.
    Returns (mean_loss, avg_sim_pos, avg_sim_neg) as f32 scalars.
    """
    n, d = centers.shape
    assert affinity.shape == (n, n)

    bm, bn, n_pad = _choose_tiling(n, block_m, block_n, _STRIP_BUDGET_BYTES)
    pad = n_pad - n
    n_rows = n_pad // bm
    n_cols = n_pad // bn

    # Hoist cosine normalization (and 1/temperature on the row operand only)
    # out of the kernel: one O(N*D) pass instead of one per tile.
    x = centers.astype(jnp.float32)
    x_hat = x * lax.rsqrt(jnp.sum(x * x, axis=1, keepdims=True) + 1e-24)
    xr = jnp.pad(x_hat * (1.0 / float(temperature)), ((0, pad), (0, 0)))
    xc = jnp.pad(x_hat, ((0, pad), (0, 0)))
    # bf16 mask: exact for the 0/1 affinity, halves the dominant N^2 HBM stream.
    mask_p = jnp.pad(affinity.astype(jnp.bfloat16), ((0, pad), (0, pad)))

    kernel = partial(_granular_loss_kernel, tm=bm, tn=bn, n_cols=n_cols,
                     pad_cols=pad)

    vmem_est = (bm * n_pad * 4                                   # strip cache
                + 2 * (bm * bn * 2 + bm * d * 4 + bn * d * 4 + bm * 8 * 4)
                + 5 * bm * 4)
    vmem_limit = int(min(max(vmem_est + (4 << 20), 16 << 20), 48 << 20))

    cost = pl.CostEstimate(
        flops=2 * n_pad * n_pad * d + 12 * n_pad * n_pad,
        transcendentals=2 * n_pad * n_pad,
        bytes_accessed=2 * n_pad * n_pad + n_rows * n_pad * d * 4
                       + n_pad * d * 8 + n_pad * 8 * 4)

    out = pl.pallas_call(
        kernel,
        grid=(n_rows, n_cols),
        in_specs=[
            pl.BlockSpec((bm, bn), lambda i, j: (i, j)),   # affinity tile (streamed once)
            pl.BlockSpec((bm, d), lambda i, j: (i, 0)),    # row centers (per row block)
            pl.BlockSpec((bn, d), lambda i, j: (j, 0)),    # col centers (streamed)
        ],
        out_specs=pl.BlockSpec((bm, 8), lambda i, j: (i, 0)),
        out_shape=jax.ShapeDtypeStruct((n_pad, 8), jnp.float32),
        scratch_shapes=[
            pltpu.VMEM((n_cols, bm, bn), jnp.float32),     # pos_mask*exp(sim) row strip
            pltpu.VMEM((bm, 1), jnp.float32),              # sum_j exp(sim_neg)
            pltpu.VMEM((bm, 1), jnp.float32),              # sum sim_pos
            pltpu.VMEM((bm, 1), jnp.float32),              # sum pos_mask
            pltpu.VMEM((bm, 1), jnp.float32),              # sum sim_neg
            pltpu.VMEM((bm, 1), jnp.float32),              # sum mask
        ],
        compiler_params=pltpu.CompilerParams(
            # TODO(synk): use pltpu.CORE_PARALLEL on axis 0 for v7x (2 TCs/chip).
            dimension_semantics=("parallel", "arbitrary"),
            vmem_limit_bytes=vmem_limit),
        cost_estimate=cost,
    )(mask_p, xr, xc)

    sum_losslog = jnp.sum(out[:, 0])
    sum_simpos = jnp.sum(out[:, 1])
    sum_posmask = jnp.sum(out[:, 2])
    sum_simneg = jnp.sum(out[:, 3])
    sum_mask = jnp.sum(out[:, 4])

    loss = (sum_losslog - sum_simpos) / n
    avg_sim_pos = sum_simpos / sum_posmask
    avg_sim_neg = sum_simneg / (jnp.float32(n * n) - sum_mask)
    return loss, avg_sim_pos, avg_sim_neg


def _reference(affinity, centers, temperature=1.0):
    """Pure-JAX mirror of the torch forward (for sanity checking)."""
    n = centers.shape[0]
    pos_mask = affinity.astype(jnp.float32)
    neg_mask = 1.0 - pos_mask
    pos_mask = pos_mask * (1.0 - jnp.eye(n, dtype=jnp.float32))
    x = centers.astype(jnp.float32)
    norm_x = jnp.linalg.norm(x, axis=1, keepdims=True)
    sim_x = (x @ x.T) / (norm_x @ norm_x.T + 1e-12)
    sim_pos = pos_mask * sim_x / temperature
    sim_neg = neg_mask * sim_x / temperature
    exp_sim_neg = jnp.sum(jnp.exp(sim_neg), axis=1, keepdims=True)
    expsum_sim = jnp.exp(sim_pos) + exp_sim_neg
    loss = -(sim_pos - jnp.log(expsum_sim) * pos_mask)
    return (jnp.sum(loss) / n,
            jnp.sum(sim_pos) / jnp.sum(pos_mask),
            jnp.sum(sim_neg) / jnp.sum(neg_mask))


if __name__ == "__main__":
    key = jax.random.PRNGKey(0)
    k_lab, k_x, k_lab2, k_x2 = jax.random.split(key, 4)

    # Small single-tile case: N granular-ball instances, D-dim centers.
    N, D = 8, 32
    labels = jax.random.randint(k_lab, (N,), 0, 3)
    affinity = (labels[:, None] == labels[None, :]).astype(jnp.float32)
    centers = jax.random.normal(k_x, (N, D), dtype=jnp.float32)

    out = granular_contrastive_loss(affinity, centers, temperature=0.5)
    jax.block_until_ready(out)
    ref = _reference(affinity, centers, temperature=0.5)
    for a, b in zip(out, ref):
        assert jnp.allclose(a, b, rtol=1e-5, atol=1e-5), (a, b)

    # Multi-tile + padding path (exercises the strip cache, diagonal gating and
    # the pad-column compensation).
    N2, D2 = 200, 32
    labels2 = jax.random.randint(k_lab2, (N2,), 0, 7)
    affinity2 = (labels2[:, None] == labels2[None, :]).astype(jnp.float32)
    centers2 = jax.random.normal(k_x2, (N2, D2), dtype=jnp.float32)
    out2 = granular_contrastive_loss(affinity2, centers2, temperature=1.0,
                                     block_m=64, block_n=128)
    jax.block_until_ready(out2)
    ref2 = _reference(affinity2, centers2, temperature=1.0)
    for a, b in zip(out2, ref2):
        assert jnp.allclose(a, b, rtol=1e-4, atol=1e-4), (a, b)

    print("KERNEL_OK")
</pallas_src>

<mosaic_0001>
module attributes {stable_mosaic.version = 11 : i64} {
  func.func @_granular_loss_kernel(%arg0: i32, %arg1: i32, %arg2: memref<8x8xbf16, #tpu.memory_space<vmem>>, %arg3: memref<8x32xf32, #tpu.memory_space<vmem>>, %arg4: memref<8x32xf32, #tpu.memory_space<vmem>>, %arg5: memref<8x8xf32, #tpu.memory_space<vmem>>, %arg6: memref<1x8x8xf32, #tpu.memory_space<vmem>>, %arg7: memref<8x1xf32, #tpu.memory_space<vmem>>, %arg8: memref<8x1xf32, #tpu.memory_space<vmem>>, %arg9: memref<8x1xf32, #tpu.memory_space<vmem>>, %arg10: memref<8x1xf32, #tpu.memory_space<vmem>>, %arg11: memref<8x1xf32, #tpu.memory_space<vmem>>) attributes {dimension_semantics = [#tpu.dimension_semantics<parallel>, #tpu.dimension_semantics<arbitrary>], iteration_bounds = array<i64: 1, 1>, scalar_prefetch = 0 : i64, scratch_operands = 6 : i64, tpu.core_type = #tpu.core_type<tc>, window_params = [{transform_indices = @transform_0, window_bounds = array<i64: 8, 8>}, {transform_indices = @transform_1, window_bounds = array<i64: 8, 32>}, {transform_indices = @transform_2, window_bounds = array<i64: 8, 32>}, {transform_indices = @transform_3, window_bounds = array<i64: 8, 8>}]} {
    %c0_i32 = arith.constant 0 : i32
    %0 = arith.cmpi eq, %arg1, %c0_i32 : i32
    %1 = arith.extui %0 : i1 to i32
    %c0_i32_0 = arith.constant 0 : i32
    %2 = arith.cmpi ne, %1, %c0_i32_0 : i32
    scf.if %2 {
      %cst_31 = arith.constant -0.000000e+00 : f32
      %46 = vector.broadcast %cst_31 : f32 to vector<8x1xf32>
      %c0_32 = arith.constant 0 : index
      %c0_33 = arith.constant 0 : index
      %47 = vector.load %arg7[%c0_32, %c0_33] : memref<8x1xf32, #tpu.memory_space<vmem>>, vector<8x1xf32>
      tpu.vector_store %arg7[%c0_32, %c0_33], %46 {strides = array<i32>} : memref<8x1xf32, #tpu.memory_space<vmem>>, vector<8x1xf32>,
      %cst_34 = arith.constant 0.000000e+00 : f32
      %48 = vector.broadcast %cst_34 : f32 to vector<8x1xf32>
      %c0_35 = arith.constant 0 : index
      %c0_36 = arith.constant 0 : index
      %49 = vector.load %arg8[%c0_35, %c0_36] : memref<8x1xf32, #tpu.memory_space<vmem>>, vector<8x1xf32>
      tpu.vector_store %arg8[%c0_35, %c0_36], %48 {strides = array<i32>} : memref<8x1xf32, #tpu.memory_space<vmem>>, vector<8x1xf32>,
      %cst_37 = arith.constant 0.000000e+00 : f32
      %50 = vector.broadcast %cst_37 : f32 to vector<8x1xf32>
      %c0_38 = arith.constant 0 : index
      %c0_39 = arith.constant 0 : index
      %51 = vector.load %arg9[%c0_38, %c0_39] : memref<8x1xf32, #tpu.memory_space<vmem>>, vector<8x1xf32>
      tpu.vector_store %arg9[%c0_38, %c0_39], %50 {strides = array<i32>} : memref<8x1xf32, #tpu.memory_space<vmem>>, vector<8x1xf32>,
      %cst_40 = arith.constant 0.000000e+00 : f32
      %52 = vector.broadcast %cst_40 : f32 to vector<8x1xf32>
      %c0_41 = arith.constant 0 : index
      %c0_42 = arith.constant 0 : index
      %53 = vector.load %arg10[%c0_41, %c0_42] : memref<8x1xf32, #tpu.memory_space<vmem>>, vector<8x1xf32>
      tpu.vector_store %arg10[%c0_41, %c0_42], %52 {strides = array<i32>} : memref<8x1xf32, #tpu.memory_space<vmem>>, vector<8x1xf32>,
      %cst_43 = arith.constant 0.000000e+00 : f32
      %54 = vector.broadcast %cst_43 : f32 to vector<8x1xf32>
      %c0_44 = arith.constant 0 : index
      %c0_45 = arith.constant 0 : index
      %55 = vector.load %arg11[%c0_44, %c0_45] : memref<8x1xf32, #tpu.memory_space<vmem>>, vector<8x1xf32>
      tpu.vector_store %arg11[%c0_44, %c0_45], %54 {strides = array<i32>} : memref<8x1xf32, #tpu.memory_space<vmem>>, vector<8x1xf32>,
    } else {
    }
    %c0 = arith.constant 0 : index
    %c0_1 = arith.constant 0 : index
    %3 = vector.load %arg2[%c0, %c0_1] : memref<8x8xbf16, #tpu.memory_space<vmem>>, vector<8x8xbf16>
    %4 = arith.extf %3 : vector<8x8xbf16> to vector<8x8xf32>
    %c0_2 = arith.constant 0 : index
    %c0_3 = arith.constant 0 : index
    %5 = vector.load %arg3[%c0_2, %c0_3] : memref<8x32xf32, #tpu.memory_space<vmem>>, vector<8x32xf32>
    %c0_4 = arith.constant 0 : index
    %c0_5 = arith.constant 0 : index
    %6 = vector.load %arg4[%c0_4, %c0_5] : memref<8x32xf32, #tpu.memory_space<vmem>>, vector<8x32xf32>
    %cst = arith.constant dense<0.000000e+00> : vector<8x8xf32>
    %7 = tpu.matmul %5, %6, %cst {dimension_numbers = #tpu.dot_dimension_numbers<[1], [1], [0], [0], [0, 0, 1, 0], [], []>} : vector<8x32xf32>, vector<8x32xf32>, vector<8x8xf32> -> vector<8x8xf32>
    %8 = math.exp %7 : vector<8x8xf32>
    %c0_6 = arith.constant 0 : index
    %c0_7 = arith.constant 0 : index
    %9 = vector.load %arg7[%c0_6, %c0_7] : memref<8x1xf32, #tpu.memory_space<vmem>>, vector<8x1xf32>
    %cst_8 = arith.constant 0.000000e+00 : f32
    %10 = vector.broadcast %cst_8 : f32 to vector<8x8xf32>
    %11 = arith.cmpf ogt, %4, %10 : vector<8x8xf32>
    %cst_9 = arith.constant 1.000000e+00 : f32
    %12 = vector.broadcast %cst_9 : f32 to vector<8x8xf32>
    %13 = arith.select %11, %12, %8 : vector<8x8xi1>, vector<8x8xf32>
    %cst_10 = arith.constant dense<0.000000e+00> : vector<8xf32>
    %14 = vector.multi_reduction <add>, %13, %cst_10 [1] : vector<8x8xf32> to vector<8xf32>
    %15 = vector.shape_cast %14 : vector<8xf32> to vector<8x1xf32>
    %16 = arith.addf %9, %15 : vector<8x1xf32>
    %c0_11 = arith.constant 0 : index
    %c0_12 = arith.constant 0 : index
    %17 = vector.load %arg7[%c0_11, %c0_12] : memref<8x1xf32, #tpu.memory_space<vmem>>, vector<8x1xf32>
    tpu.vector_store %arg7[%c0_11, %c0_12], %16 {strides = array<i32>} : memref<8x1xf32, #tpu.memory_space<vmem>>, vector<8x1xf32>,
    %c0_13 = arith.constant 0 : index
    %c0_14 = arith.constant 0 : index
    %18 = vector.load %arg10[%c0_13, %c0_14] : memref<8x1xf32, #tpu.memory_space<vmem>>, vector<8x1xf32>
    %cst_15 = arith.constant 1.000000e+00 : f32
    %19 = vector.broadcast %cst_15 : f32 to vector<8x8xf32>
    %20 = arith.subf %19, %4 : vector<8x8xf32>
    %21 = arith.mulf %20, %7 : vector<8x8xf32>
    %cst_16 = arith.constant dense<0.000000e+00> : vector<8xf32>
    %22 = vector.multi_reduction <add>, %21, %cst_16 [1] : vector<8x8xf32> to vector<8xf32>
    %23 = vector.shape_cast %22 : vector<8xf32> to vector<8x1xf32>
    %24 = arith.addf %18, %23 : vector<8x1xf32>
    %c0_17 = arith.constant 0 : index
    %c0_18 = arith.constant 0 : index
    %25 = vector.load %arg10[%c0_17, %c0_18] : memref<8x1xf32, #tpu.memory_space<vmem>>, vector<8x1xf32>
    tpu.vector_store %arg10[%c0_17, %c0_18], %24 {strides = array<i32>} : memref<8x1xf32, #tpu.memory_space<vmem>>, vector<8x1xf32>,
    %c0_19 = arith.constant 0 : index
    %c0_20 = arith.constant 0 : index
    %26 = vector.load %arg11[%c0_19, %c0_20] : memref<8x1xf32, #tpu.memory_space<vmem>>, vector<8x1xf32>
    %cst_21 = arith.constant dense<0.000000e+00> : vector<8xf32>
    %27 = vector.multi_reduction <add>, %4, %cst_21 [1] : vector<8x8xf32> to vector<8xf32>
    %28 = vector.shape_cast %27 : vector<8xf32> to vector<8x1xf32>
    %29 = arith.addf %26, %28 : vector<8x1xf32>
    %c0_22 = arith.constant 0 : index
    %c0_23 = arith.constant 0 : index
    %30 = vector.load %arg11[%c0_22, %c0_23] : memref<8x1xf32, #tpu.memory_space<vmem>>, vector<8x1xf32>
    tpu.vector_store %arg11[%c0_22, %c0_23], %29 {strides = array<i32>} : memref<8x1xf32, #tpu.memory_space<vmem>>, vector<8x1xf32>,
    %c8_i32 = arith.constant 8 : i32
    %31 = arith.muli %arg0, %c8_i32 : i32
    %c8_i32_24 = arith.constant 8 : i32
    %32 = arith.muli %arg1, %c8_i32_24 : i32
    %c8_i32_25 = arith.constant 8 : i32
    %33 = arith.addi %32, %c8_i32_25 : i32
    %34 = arith.cmpi slt, %31, %33 : i32
    %c8_i32_26 = arith.constant 8 : i32
    %35 = arith.addi %31, %c8_i32_26 : i32
    %36 = arith.cmpi slt, %32, %35 : i32
    %37 = arith.andi %34, %36 : i1
    %38 = arith.extui %37 : i1 to i32
    %c0_i32_27 = arith.constant 0 : i32
    %39 = arith.cmpi ne, %38, %c0_i32_27 : i32
    scf.if %39 {
      %46 = tpu.iota {dimensions = array<i32: 0>} : vector<8x8xi32>
      %47 = vector.broadcast %31 : i32 to vector<8x8xi32>
      %48 = arith.addi %46, %47 : vector<8x8xi32>
      %49 = tpu.iota {dimensions = array<i32: 1>} : vector<8x8xi32>
      %50 = vector.broadcast %32 : i32 to vector<8x8xi32>
      %51 = arith.addi %49, %50 : vector<8x8xi32>
      %52 = arith.cmpi eq, %48, %51 : vector<8x8xi32>
      %cst_31 = arith.constant 0.000000e+00 : f32
      %53 = vector.broadcast %cst_31 : f32 to vector<8x8xf32>
      %54 = arith.select %52, %53, %4 : vector<8x8xi1>, vector<8x8xf32>
      %55 = arith.mulf %54, %8 : vector<8x8xf32>
      %56 = arith.index_cast %arg1 : i32 to index
      %c0_32 = arith.constant 0 : index
      %c0_33 = arith.constant 0 : index
      %57 = vector.load %arg6[%56, %c0_32, %c0_33] : memref<1x8x8xf32, #tpu.memory_space<vmem>>, vector<1x8x8xf32>
      %58 = vector.shape_cast %57 : vector<1x8x8xf32> to vector<8x8xf32>
      %59 = vector.shape_cast %55 : vector<8x8xf32> to vector<1x8x8xf32>
      tpu.vector_store %arg6[%56, %c0_32, %c0_33], %59 {strides = array<i32>} : memref<1x8x8xf32, #tpu.memory_space<vmem>>, vector<1x8x8xf32>,
      %c0_34 = arith.constant 0 : index
      %c0_35 = arith.constant 0 : index
      %60 = vector.load %arg8[%c0_34, %c0_35] : memref<8x1xf32, #tpu.memory_space<vmem>>, vector<8x1xf32>
      %61 = arith.mulf %54, %7 : vector<8x8xf32>
      %cst_36 = arith.constant dense<0.000000e+00> : vector<8xf32>
      %62 = vector.multi_reduction <add>, %61, %cst_36 [1] : vector<8x8xf32> to vector<8xf32>
      %63 = vector.shape_cast %62 : vector<8xf32> to vector<8x1xf32>
      %64 = arith.addf %60, %63 : vector<8x1xf32>
      %c0_37 = arith.constant 0 : index
      %c0_38 = arith.constant 0 : index
      %65 = vector.load %arg8[%c0_37, %c0_38] : memref<8x1xf32, #tpu.memory_space<vmem>>, vector<8x1xf32>
      tpu.vector_store %arg8[%c0_37, %c0_38], %64 {strides = array<i32>} : memref<8x1xf32, #tpu.memory_space<vmem>>, vector<8x1xf32>,
      %c0_39 = arith.constant 0 : index
      %c0_40 = arith.constant 0 : index
      %66 = vector.load %arg9[%c0_39, %c0_40] : memref<8x1xf32, #tpu.memory_space<vmem>>, vector<8x1xf32>
      %cst_41 = arith.constant dense<0.000000e+00> : vector<8xf32>
      %67 = vector.multi_reduction <add>, %54, %cst_41 [1] : vector<8x8xf32> to vector<8xf32>
      %68 = vector.shape_cast %67 : vector<8xf32> to vector<8x1xf32>
      %69 = arith.addf %66, %68 : vector<8x1xf32>
      %c0_42 = arith.constant 0 : index
      %c0_43 = arith.constant 0 : index
      %70 = vector.load %arg9[%c0_42, %c0_43] : memref<8x1xf32, #tpu.memory_space<vmem>>, vector<8x1xf32>
      tpu.vector_store %arg9[%c0_42, %c0_43], %69 {strides = array<i32>} : memref<8x1xf32, #tpu.memory_space<vmem>>, vector<8x1xf32>,
    } else {
    }
    %true = arith.constant true
    %40 = arith.xori %37, %true : i1
    %41 = arith.extui %40 : i1 to i32
    %c0_i32_28 = arith.constant 0 : i32
    %42 = arith.cmpi ne, %41, %c0_i32_28 : i32
    scf.if %42 {
      %46 = arith.mulf %4, %8 : vector<8x8xf32>
      %47 = arith.index_cast %arg1 : i32 to index
      %c0_31 = arith.constant 0 : index
      %c0_32 = arith.constant 0 : index
      %48 = vector.load %arg6[%47, %c0_31, %c0_32] : memref<1x8x8xf32, #tpu.memory_space<vmem>>, vector<1x8x8xf32>
      %49 = vector.shape_cast %48 : vector<1x8x8xf32> to vector<8x8xf32>
      %50 = vector.shape_cast %46 : vector<8x8xf32> to vector<1x8x8xf32>
      tpu.vector_store %arg6[%47, %c0_31, %c0_32], %50 {strides = array<i32>} : memref<1x8x8xf32, #tpu.memory_space<vmem>>, vector<1x8x8xf32>,
      %c0_33 = arith.constant 0 : index
      %c0_34 = arith.constant 0 : index
      %51 = vector.load %arg8[%c0_33, %c0_34] : memref<8x1xf32, #tpu.memory_space<vmem>>, vector<8x1xf32>
      %52 = arith.mulf %4, %7 : vector<8x8xf32>
      %cst_35 = arith.constant dense<0.000000e+00> : vector<8xf32>
      %53 = vector.multi_reduction <add>, %52, %cst_35 [1] : vector<8x8xf32> to vector<8xf32>
      %54 = vector.shape_cast %53 : vector<8xf32> to vector<8x1xf32>
      %55 = arith.addf %51, %54 : vector<8x1xf32>
      %c0_36 = arith.constant 0 : index
      %c0_37 = arith.constant 0 : index
      %56 = vector.load %arg8[%c0_36, %c0_37] : memref<8x1xf32, #tpu.memory_space<vmem>>, vector<8x1xf32>
      tpu.vector_store %arg8[%c0_36, %c0_37], %55 {strides = array<i32>} : memref<8x1xf32, #tpu.memory_space<vmem>>, vector<8x1xf32>,
      %c0_38 = arith.constant 0 : index
      %c0_39 = arith.constant 0 : index
      %57 = vector.load %arg9[%c0_38, %c0_39] : memref<8x1xf32, #tpu.memory_space<vmem>>, vector<8x1xf32>
      %cst_40 = arith.constant dense<0.000000e+00> : vector<8xf32>
      %58 = vector.multi_reduction <add>, %4, %cst_40 [1] : vector<8x8xf32> to vector<8xf32>
      %59 = vector.shape_cast %58 : vector<8xf32> to vector<8x1xf32>
      %60 = arith.addf %57, %59 : vector<8x1xf32>
      %c0_41 = arith.constant 0 : index
      %c0_42 = arith.constant 0 : index
      %61 = vector.load %arg9[%c0_41, %c0_42] : memref<8x1xf32, #tpu.memory_space<vmem>>, vector<8x1xf32>
      tpu.vector_store %arg9[%c0_41, %c0_42], %60 {strides = array<i32>} : memref<8x1xf32, #tpu.memory_space<vmem>>, vector<8x1xf32>,
    } else {
    }
    %c0_i32_29 = arith.constant 0 : i32
    %43 = arith.cmpi eq, %arg1, %c0_i32_29 : i32
    %44 = arith.extui %43 : i1 to i32
    %c0_i32_30 = arith.constant 0 : i32
    %45 = arith.cmpi ne, %44, %c0_i32_30 : i32
    scf.if %45 {
      %c0_31 = arith.constant 0 : index
      %c0_32 = arith.constant 0 : index
      %46 = vector.load %arg7[%c0_31, %c0_32] : memref<8x1xf32, #tpu.memory_space<vmem>>, vector<8x1xf32>
      %cst_33 = arith.constant 0.000000e+00 : f32
      %47 = vector.broadcast %cst_33 : f32 to vector<8x1xf32>
      %c0_i32_34 = arith.constant 0 : i32
      %48 = arith.index_cast %c0_i32_34 : i32 to index
      %c0_35 = arith.constant 0 : index
      %c0_36 = arith.constant 0 : index
      %49 = vector.load %arg6[%48, %c0_35, %c0_36] : memref<1x8x8xf32, #tpu.memory_space<vmem>>, vector<1x8x8xf32>
      %50 = vector.shape_cast %49 : vector<1x8x8xf32> to vector<8x8xf32>
      %cst_37 = arith.constant 0.000000e+00 : f32
      %51 = vector.broadcast %cst_37 : f32 to vector<8x8xf32>
      %52 = arith.cmpf ogt, %50, %51 : vector<8x8xf32>
      %53 = vector.broadcast %46 : vector<8x1xf32> to vector<8x8xf32>
      %54 = arith.addf %50, %53 : vector<8x8xf32>
      %cst_38 = arith.constant 1.000000e+00 : f32
      %55 = vector.broadcast %cst_38 : f32 to vector<8x8xf32>
      %56 = arith.select %52, %54, %55 : vector<8x8xi1>, vector<8x8xf32>
      %57 = math.log %56 : vector<8x8xf32>
      %cst_39 = arith.constant dense<0.000000e+00> : vector<8xf32>
      %58 = vector.multi_reduction <add>, %57, %cst_39 [1] : vector<8x8xf32> to vector<8xf32>
      %59 = vector.shape_cast %58 : vector<8xf32> to vector<8x1xf32>
      %60 = arith.addf %47, %59 : vector<8x1xf32>
      %c1_i32 = arith.constant 1 : i32
      %61 = tpu.iota {dimensions = array<i32: 1>} : vector<8x8xi32>
      %c0_i32_40 = arith.constant 0 : i32
      %62 = vector.broadcast %c0_i32_40 : i32 to vector<8x8xi32>
      %63 = arith.cmpi eq, %61, %62 : vector<8x8xi32>
      %cst_41 = arith.constant 0.000000e+00 : f32
      %64 = vector.shape_cast %60 : vector<8x1xf32> to vector<8x1xf32>
      %65 = vector.broadcast %64 : vector<8x1xf32> to vector<8x8xf32>
      %66 = vector.broadcast %cst_41 : f32 to vector<8x8xf32>
      %67 = arith.select %63, %65, %66 : vector<8x8xi1>, vector<8x8xf32>
      %c1_i32_42 = arith.constant 1 : i32
      %68 = vector.broadcast %c1_i32_42 : i32 to vector<8x8xi32>
      %69 = arith.cmpi eq, %61, %68 : vector<8x8xi32>
      %c0_43 = arith.constant 0 : index
      %c0_44 = arith.constant 0 : index
      %70 = vector.load %arg8[%c0_43, %c0_44] : memref<8x1xf32, #tpu.memory_space<vmem>>, vector<8x1xf32>
      %cst_45 = arith.constant 0.000000e+00 : f32
      %71 = vector.shape_cast %70 : vector<8x1xf32> to vector<8x1xf32>
      %72 = vector.broadcast %71 : vector<8x1xf32> to vector<8x8xf32>
      %73 = vector.broadcast %cst_45 : f32 to vector<8x8xf32>
      %74 = arith.select %69, %72, %73 : vector<8x8xi1>, vector<8x8xf32>
      %75 = arith.addf %67, %74 : vector<8x8xf32>
      %c2_i32 = arith.constant 2 : i32
      %76 = vector.broadcast %c2_i32 : i32 to vector<8x8xi32>
      %77 = arith.cmpi eq, %61, %76 : vector<8x8xi32>
      %c0_46 = arith.constant 0 : index
      %c0_47 = arith.constant 0 : index
      %78 = vector.load %arg9[%c0_46, %c0_47] : memref<8x1xf32, #tpu.memory_space<vmem>>, vector<8x1xf32>
      %cst_48 = arith.constant 0.000000e+00 : f32
      %79 = vector.shape_cast %78 : vector<8x1xf32> to vector<8x1xf32>
      %80 = vector.broadcast %79 : vector<8x1xf32> to vector<8x8xf32>
      %81 = vector.broadcast %cst_48 : f32 to vector<8x8xf32>
      %82 = arith.select %77, %80, %81 : vector<8x8xi1>, vector<8x8xf32>
      %83 = arith.addf %75, %82 : vector<8x8xf32>
      %c3_i32 = arith.constant 3 : i32
      %84 = vector.broadcast %c3_i32 : i32 to vector<8x8xi32>
      %85 = arith.cmpi eq, %61, %84 : vector<8x8xi32>
      %c0_49 = arith.constant 0 : index
      %c0_50 = arith.constant 0 : index
      %86 = vector.load %arg10[%c0_49, %c0_50] : memref<8x1xf32, #tpu.memory_space<vmem>>, vector<8x1xf32>
      %cst_51 = arith.constant 0.000000e+00 : f32
      %87 = vector.shape_cast %86 : vector<8x1xf32> to vector<8x1xf32>
      %88 = vector.broadcast %87 : vector<8x1xf32> to vector<8x8xf32>
      %89 = vector.broadcast %cst_51 : f32 to vector<8x8xf32>
      %90 = arith.select %85, %88, %89 : vector<8x8xi1>, vector<8x8xf32>
      %91 = arith.addf %83, %90 : vector<8x8xf32>
      %c4_i32 = arith.constant 4 : i32
      %92 = vector.broadcast %c4_i32 : i32 to vector<8x8xi32>
      %93 = arith.cmpi eq, %61, %92 : vector<8x8xi32>
      %c0_52 = arith.constant 0 : index
      %c0_53 = arith.constant 0 : index
      %94 = vector.load %arg11[%c0_52, %c0_53] : memref<8x1xf32, #tpu.memory_space<vmem>>, vector<8x1xf32>
      %cst_54 = arith.constant 0.000000e+00 : f32
      %95 = vector.shape_cast %94 : vector<8x1xf32> to vector<8x1xf32>
      %96 = vector.broadcast %95 : vector<8x1xf32> to vector<8x8xf32>
      %97 = vector.broadcast %cst_54 : f32 to vector<8x8xf32>
      %98 = arith.select %93, %96, %97 : vector<8x8xi1>, vector<8x8xf32>
      %99 = arith.addf %91, %98 : vector<8x8xf32>
      %c0_55 = arith.constant 0 : index
      %c0_56 = arith.constant 0 : index
      %100 = vector.load %arg5[%c0_55, %c0_56] : memref<8x8xf32, #tpu.memory_space<vmem>>, vector<8x8xf32>
      tpu.vector_store %arg5[%c0_55, %c0_56], %99 {strides = array<i32>} : memref<8x8xf32, #tpu.memory_space<vmem>>, vector<8x8xf32>,
    } else {
    }
    return
  }
  func.func @transform_0(%arg0: i32, %arg1: i32) -> (i32, i32) {
    %c0_i32 = arith.constant 0 : i32
    return %arg0, %arg1 : i32, i32
  }
  func.func @transform_1(%arg0: i32, %arg1: i32) -> (i32, i32) {
    %c0_i32 = arith.constant 0 : i32
    %c0_i32_0 = arith.constant 0 : i32
    return %arg0, %c0_i32 : i32, i32
  }
  func.func @transform_2(%arg0: i32, %arg1: i32) -> (i32, i32) {
    %c0_i32 = arith.constant 0 : i32
    %c0_i32_0 = arith.constant 0 : i32
    return %arg1, %c0_i32 : i32, i32
  }
  func.func @transform_3(%arg0: i32, %arg1: i32) -> (i32, i32) {
    %c0_i32 = arith.constant 0 : i32
    %c0_i32_0 = arith.constant 0 : i32
    return %arg0, %c0_i32 : i32, i32
  }
}

</mosaic_0001>

<bundles_post_ra>
// kernel: tpu_custom_call.1
= control target key start
LH: loop header
LB: loop body
LE: loop exit
PB: predicated region body
PF: predicated region fallthrough
CT: control target
= control target key end

     0   :  { %8 = vsyncpa [#allocation9], 0  ;;  %s514_s0 = inlined_call_operand.hbm [shape: bf16[8,8], index: 0, kind: input, shape index: {}]   ;;  %s515_s1 = inlined_call_operand.hbm [shape: f32[8,32], index: 1, kind: input, shape index: {}]   ;;  %s516_s2 = inlined_call_operand.hbm [shape: f32[8,32], index: 2, kind: input, shape index: {}]   ;;  %s517_s3 = inlined_call_operand.hbm [shape: f32[8,8], index: 3, kind: output, shape index: {}]  }
   0x1   :  { %9 = vsyncpa [#allocation12], 0 }
   0x2   :  { %10 = vsyncpa [#allocation10], 0  ;;  %s412_s12 = smov [#allocation11]   ;;  %s413_s14 = smov [#allocation8]  }
   0x3   :  { %s27_s13 = sshll.u32 %s412_s12, 4  ;;  %s17_s15 = sshll.u32 %s413_s14, 4  ;;  %s28_s13 = int_to_ptr.vmem [resolvable:$true] %s27_s13  ;;  %s18_s15 = int_to_ptr.vmem [resolvable:$true] %s17_s15 }
   0x4   :  { %s318_s18 = scalar_lea.hbm %s515_s1, 128 }
   0x5   :  { %p319_p0 = scmp.ne.s32.totalorder %s515_s1, %s318_s18  ;;  %p322_p1 = scmp.lt.u32.totalorder %s318_s18, %s515_s1 }
   0x7   :  { %p324_p2 = pnand %p322_p1, %p319_p0 }
   0x9   :  { %327 = shalt.err (!%p324_p2)
}
   0xa   :  { %s328_s23 = scalar_lea.vmem %s28_s13, 128  ;;  %p333_p4 = scmp.lt.s32.totalorder %s28_s13, %s28_s13 }
   0xb   :  { %p329_p3 = scmp.ne.s32.totalorder %s28_s13, %s328_s23  ;;  %p334_p5 = scmp.lt.s32.totalorder %s328_s23, %s328_s23 }
   0xd   :  { %p335_p6 = por %p334_p5, %p333_p4 }
   0xf   :  { %p336_p7 = pnand %p335_p6, %p329_p3 }
  0x11   :  { %339 = shalt.err (!%p336_p7)
}
  0x12   :  { %30 = dma.hbm_to_vmem [thread:$0]  %s515_s1, 128, %s28_s13, [#allocation12]  }
  0x13   :  { %s340_s28 = scalar_lea.hbm %s514_s0, 64 }
  0x14   :  { %p341_p8 = scmp.ne.s32.totalorder %s514_s0, %s340_s28  ;;  %p344_p9 = scmp.lt.u32.totalorder %s340_s28, %s514_s0 }
  0x16   :  { %p346_p10 = pnand %p344_p9, %p341_p8 }
  0x18   :  { %349 = shalt.err (!%p346_p10)
}
  0x19   :  { %s350_s6 = scalar_lea.vmem %s18_s15, 64  ;;  %p355_p12 = scmp.lt.s32.totalorder %s18_s15, %s18_s15 }
  0x1a   :  { %p351_p11 = scmp.ne.s32.totalorder %s18_s15, %s350_s6  ;;  %p356_p13 = scmp.lt.s32.totalorder %s350_s6, %s350_s6 }
  0x1c   :  { %p357_p0 = por %p356_p13, %p355_p12 }
  0x1e   :  { %p358_p1 = pnand %p357_p0, %p351_p11 }
  0x20   :  { %361 = shalt.err (!%p358_p1)
}
  0x21   :  { %20 = dma.hbm_to_vmem [thread:$0]  %s514_s0, 64, %s18_s15, [#allocation9]  }
  0x22   :  { %s414_s8 = smov [#allocation13]   ;;  %s362_s12 = scalar_lea.hbm %s516_s2, 128 }
  0x23   :  { %s37_s9 = sshll.u32 %s414_s8, 4  ;;  %p363_p2 = scmp.ne.s32.totalorder %s516_s2, %s362_s12  ;;  %s38_s9 = int_to_ptr.vmem [resolvable:$true] %s37_s9 }
  0x24   :  { %p366_p3 = scmp.lt.u32.totalorder %s362_s12, %s516_s2 }
  0x26   :  { %p368_p4 = pnand %p366_p3, %p363_p2 }
  0x28   :  { %371 = shalt.err (!%p368_p4)
}
  0x29   :  { %s372_s18 = scalar_lea.vmem %s38_s9, 128  ;;  %p377_p6 = scmp.lt.s32.totalorder %s38_s9, %s38_s9 }
  0x2a   :  { %p373_p5 = scmp.ne.s32.totalorder %s38_s9, %s372_s18  ;;  %p378_p7 = scmp.lt.s32.totalorder %s372_s18, %s372_s18 }
  0x2c   :  { %p379_p8 = por %p378_p7, %p377_p6 }
  0x2e   :  { %p380_p9 = pnand %p379_p8, %p373_p5 }
  0x30   :  { %383 = shalt.err (!%p380_p9)
}
  0x31   :  { %40 = dma.hbm_to_vmem [thread:$0]  %s516_s2, 128, %s38_s9, [#allocation12]  }
  0x32   :  { %406 = dma.done.wait [#allocation9], 64  }
  0x33   :  { %407 = vsyncadd [#allocation9], 4294967232 }
  0x34   :  { %408 = dma.done.wait [#allocation12], 256  }
  0x35   :  { %409 = vsyncadd [#allocation12], 4294967040  ;;  %v415_v0 = vmov 0.0   ;;  %vm416_vm0 = vmmov 0   ;;  %vm64_vm1 = vcmask 261120   ;;  %v63_v1 = vld [vmem:[#allocation13] sm:$0xff]  ;;  %v177_v3 = vlaneseq }
  0x36   :  { %299 = vmatprep.subr.mxu0 %v415_v0  ;;  %301 = vmatprep.mubr.msk.f32.mxu0 %vm416_vm0, %v415_v0  ;;  %v62_v2 = vld [vmem:[#allocation11] sm:$0xff]  ;;  %vm54_vm2 = vcmask 7168   ;;  %v60_v4 = vld [vmem:[#allocation8] sm:$0xf]  ;;  %vm146_vm4 = vcmask 64512   ;;  %v417_v23 = vmov -0.0  }
  0x37   :  { %300 = vmatpush3.xpose.msk.msra.mxu0 %vm64_vm1, %v63_v1  ;;  %56 = vst.msk [vmem:[#allocation4] sm:$0xff] %vm54_vm2, %v415_v0  ;;  %57 = vst.msk [vmem:[#allocation5] sm:$0xff] %vm54_vm2, %v415_v0  ;;  %v178_v5 = vshrl.u32 %v177_v3, 7  ;;  %v480_v6 = vand.u32 127, %v177_v3  ;;  %v61_v7 = vunpack.c.l.bf16 %v60_v4  ;;  %v418_v24 = vmov 0   ;;  %s419_s2 = smov [#allocation14]  }
  0x38   :  { %58 = vst.msk [vmem:[#allocation6] sm:$0xff] %vm54_vm2, %v415_v0  ;;  %59 = vst.msk [vmem:[#allocation7] sm:$0xff] %vm54_vm2, %v415_v0  ;;  %313 = vset.pattern.permute.xlu1 %v418_v24  ;;  %312 = vset.pattern.permute.xlu0 %v418_v24  ;;  %s285_s19 = sshll.u32 %s419_s2, 4  ;;  %s286_s19 = int_to_ptr.vmem [resolvable:$true] %s285_s19 }
  0x39   :  { %vm185_vm3 = vcmp.eq.s32.totalorder %v178_v5, %v480_v6  ;;  %v154_v14 = vsub.f32 1.0, %v61_v7  ;;  %vm144_vm5 = vcmp.gt.f32.partialorder %v61_v7, 0.0  ;;  %v162_v19 = vsel %vm146_vm4, %v61_v7, 0.0  ;;  %55 = vst.msk [vmem:[#allocation3] sm:$0xff] %vm54_vm2, %v417_v23  ;;  %s384_s20 = scalar_lea.vmem %s286_s19, 128  ;;  %p389_p11 = scmp.lt.s32.totalorder %s286_s19, %s286_s19 }
  0x3a   :  { %302 = vmatmul.mubr.msk.f32.vlgmr.msra.gmra.mrb[0].mxu0 %vm64_vm1, %v62_v2  ;;  %v186_v8 = vsel %vm185_vm3, 0.0, %v61_v7  ;;  %vm242_vm7 = vcmp.eq.s32.totalorder %v480_v6, 1  ;;  %vm240_vm8 = vcmp.eq.s32.totalorder %v480_v6, 0  ;;  %vm251_vm9 = vcmp.eq.s32.totalorder %v480_v6, 2  ;;  %p385_p10 = scmp.ne.s32.totalorder %s286_s19, %s384_s20  ;;  %p390_p12 = scmp.lt.s32.totalorder %s384_s20, %s384_s20 }
  0x3b   :  { %v198_v15 = vsel %vm146_vm4, %v186_v8, 0.0  ;;  %vm260_vm10 = vcmp.eq.s32.totalorder %v480_v6, 3  ;;  %vm269_vm11 = vcmp.eq.s32.totalorder %v480_v6, 4 }
  0x3c   :  { %p391_p13 = por %p390_p12, %p389_p11 }
  0x3e   :  { %v190_v25 = vld [vmem:[#allocation4] sm:$0xff]  ;;  %v197_v28 = vld [vmem:[#allocation5] sm:$0xff]  ;;  %p392_p0 = pnand %p391_p13, %p385_p10 }
  0x3f   :  { %v153_v31 = vld [vmem:[#allocation6] sm:$0xff]  ;;  %v161_v36 = vld [vmem:[#allocation7] sm:$0xff] }
  0x40   :  { %v143_v35 = vld [vmem:[#allocation3] sm:$0xff] }
 0x10d   :  { %v137_v9 = vpop.f32.mrb[0].mxu0 }
 0x10e   :  { %v141_v10 = vmul.f32 1.442695, %v137_v9  ;;  %v303_v11 = vpop.f32.mrb[1].mxu0  ;;  %v191_v12 = vmul.f32 %v186_v8, %v137_v9  ;;  %v155_v16 = vmul.f32 %v154_v14, %v137_v9 }
 0x110   :  { %314 = vpow2.f32 %v141_v10  ;;  %v192_v13 = vsel %vm146_vm4, %v191_v12, 0.0  ;;  %v156_v17 = vsel %vm146_vm4, %v155_v16, 0.0 }
 0x111   :  { %193 = vadd.xlane.f32.xlu1 %v192_v13 }
 0x115   :  { %199 = vadd.xlane.f32.xlu1 %v198_v15 }
 0x119   :  { %157 = vadd.xlane.f32.xlu1 %v156_v17 }
 0x11a   :  { %v315_v18 = vpop.eup %314 }
 0x11b   :  { %v187_v20 = vmul.f32 %v315_v18, %v186_v8  ;;  %v145_v21 = vsel %vm144_vm5, 1.0, %v315_v18 }
 0x11c   :  { %v147_v22 = vsel %vm146_vm4, %v145_v21, 0.0 }
 0x11d   :  { %189 = vst.msk [vmem:[#allocation2] sm:$0xff] %vm146_vm4, %v187_v20  ;;  %148 = vadd.xlane.f32.xlu0 %v147_v22  ;;  %163 = vadd.xlane.f32.xlu1 %v162_v19 }
 0x124   :  { %v223_v44 = vld [vmem:[#allocation2] sm:$0xff] }
 0x125   :  { %vm224_vm6 = vcmp.gt.f32.partialorder %v223_v44, 0.0 }
 0x19e   :  { %v194_v26 = vpop.xlane.xlu1 %193 }
 0x19f   :  { %v195_v27 = vadd.f32 %v194_v26, %v190_v25 }
 0x1a1   :  { %196 = vst.msk [vmem:[#allocation4] sm:$0xff] %vm54_vm2, %v195_v27 }
 0x1a2   :  { %v200_v29 = vpop.xlane.xlu1 %199 }
 0x1a3   :  { %v201_v30 = vadd.f32 %v200_v29, %v197_v28 }
 0x1a5   :  { %202 = vst.msk [vmem:[#allocation5] sm:$0xff] %vm54_vm2, %v201_v30 }
 0x1a6   :  { %v158_v32 = vpop.xlane.xlu1 %157 }
 0x1a7   :  { %v159_v33 = vadd.f32 %v158_v32, %v153_v31 }
 0x1a8   :  { %v243_v34 = vld [vmem:[#allocation4] sm:$0xff] }
 0x1a9   :  { %160 = vst.msk [vmem:[#allocation6] sm:$0xff] %vm54_vm2, %v159_v33  ;;  %246 = vperm.xlu1 %313, %v243_v34  }
 0x1aa   :  { %v149_v37 = vpop.xlane.xlu0 %148  ;;  %v164_v38 = vpop.xlane.xlu1 %163 }
 0x1ab   :  { %v150_v39 = vadd.f32 %v149_v37, %v143_v35  ;;  %v165_v40 = vadd.f32 %v164_v38, %v161_v36 }
 0x1ac   :  { %v252_v41 = vld [vmem:[#allocation5] sm:$0xff] }
 0x1ad   :  { %152 = vst.msk [vmem:[#allocation3] sm:$0xff] %vm54_vm2, %v150_v39  ;;  %255 = vperm.xlu1 %313, %v252_v41   ;;  %166 = vst.msk [vmem:[#allocation7] sm:$0xff] %vm54_vm2, %v165_v40 }
 0x1b0   :  { %v261_v42 = vld [vmem:[#allocation6] sm:$0xff] }
 0x1b1   :  { %264 = vperm.xlu1 %313, %v261_v42  }
 0x1b4   :  { %v222_v43 = vld [vmem:[#allocation3] sm:$0xff] }
 0x1b5   :  { %227 = vperm.xlu0 %312, %v222_v43   ;;  %v270_v51 = vld [vmem:[#allocation7] sm:$0xff] }
 0x228   :  { %v247_v52 = vpop.permute.xlu1 %246 }
 0x229   :  { %v249_v56 = vsel %vm242_vm7, %v247_v52, 0.0 }
 0x22c   :  { %v256_v53 = vpop.permute.xlu1 %255 }
 0x22d   :  { %v258_v59 = vsel %vm251_vm9, %v256_v53, 0.0 }
 0x230   :  { %v265_v54 = vpop.permute.xlu1 %264 }
 0x231   :  { %v267_v62 = vsel %vm260_vm10, %v265_v54, 0.0 }
 0x234   :  { %v228_v45 = vpop.permute.xlu0 %227 }
 0x235   :  { %v230_v46 = vadd.f32 %v228_v45, %v223_v44 }
 0x237   :  { %v231_v47 = vsel %vm224_vm6, %v230_v46, 1.0 }
 0x238   :  { %316 = vlog2.f32 %v231_v47 }
 0x242   :  { %v317_v48 = vpop.eup %316 }
 0x243   :  { %v233_v49 = vmul.f32 0.6931472, %v317_v48 }
 0x245   :  { %v234_v50 = vsel %vm146_vm4, %v233_v49, 0.0 }
 0x246   :  { %235 = vadd.xlane.f32.xlu1 %v234_v50 }
 0x257   :  { %273 = vperm.xlu1 %313, %v270_v51  }
 0x2d3   :  { %v236_v55 = vpop.xlane.xlu1 %235 }
 0x2d4   :  { %v241_v57 = vsel %vm240_vm8, %v236_v55, 0.0 }
 0x2d5   :  { %v250_v58 = vadd.f32 %v249_v56, %v241_v57 }
 0x2d7   :  { %v259_v60 = vadd.f32 %v258_v59, %v250_v58  ;;  %v274_v61 = vpop.permute.xlu1 %273 }
 0x2d8   :  { %v276_v0 = vsel %vm269_vm11, %v274_v61, 0.0 }
 0x2d9   :  { %v268_v63 = vadd.f32 %v267_v62, %v259_v60 }
 0x2db   :  { %v277_v1 = vadd.f32 %v276_v0, %v268_v63 }
 0x2dd   :  { %278 = vst.msk [vmem:[#allocation14] sm:$0xff] %vm146_vm4, %v277_v1 }
 0x2de   :  { %395 = shalt.err (!%p392_p0)
}
 0x2df   :  { %s396_s23 = scalar_lea.hbm %s517_s3, 128 }
 0x2e0   :  { %p397_p1 = scmp.ne.s32.totalorder %s517_s3, %s396_s23  ;;  %p400_p2 = scmp.lt.u32.totalorder %s396_s23, %s517_s3 }
 0x2e2   :  { %p402_p3 = pnand %p400_p2, %p397_p1 }
 0x2e4   :  { %405 = shalt.err (!%p402_p3)
}
 0x2e5   :  { %288 = dma.vmem_to_hbm [thread:$0]  %s286_s19, 128, %s517_s3, [#allocation10]  }
 0x2e6   :  { %410 = dma.done.wait [#allocation10], 128  }
 0x2e7   :  { %411 = vsyncadd [#allocation10], 4294967168 }
 0x2e8   :  { %292 = vsyncpa [#allocation9], 1 }
 0x2e9   :  { %293 = vsyncpa [#allocation12], 1 }
 0x2ea   :  { %294 = vsyncpa [#allocation10], 1 }

</bundles_post_ra>
